<compile_context>
chip_gen: v5e
topology: v5e:2x2
jax: 0.10.0
libtpu: 0.0.40
codegen_flags: <defaults>
</compile_context>

<pallas_src>
import functools

import jax
import jax.numpy as jnp
from jax.experimental import pallas as pl
from jax.experimental.pallas import tpu as pltpu


def _shallow_correction_kernel(x_ref, w1_ref, b1_ref, w2_ref, b2_ref, o_ref):
    # Layer 1: Linear + Tanh (MXU matmul, f32 accumulation, EUP tanh in f32).
    z1 = jnp.dot(x_ref[...], w1_ref[...], preferred_element_type=jnp.float32)
    a1 = jnp.tanh(z1 + b1_ref[...])            # (TBP, pack*H) + (1, pack*H)
    # Layer 2: Linear + Tanh.
    z2 = jnp.dot(a1.astype(w2_ref.dtype), w2_ref[...],
                 preferred_element_type=jnp.float32)
    o_ref[...] = jnp.tanh(z2 + b2_ref[...]).astype(o_ref.dtype)


def _round_up(x, m):
    return ((x + m - 1) // m) * m


def prepare_params(w1, b1, w2, b2, use_bf16=True):
    """One-time conversion of torch-layout params to packed kernel layout.

    torch layout: w (out_features, in_features), b (out_features,).
    Kernel layout: `pack` consecutive batch rows share one 128-lane row, so the
    weights become block-diagonal:
      W1_bd (pack*IN, pack*H), W2_bd (pack*H, pack*O), biases tiled `pack` times.
    Returns (w1_bd, b1_tiled, w2_bd, b2_tiled, pack).  Call once, reuse.
    """
    w1 = jnp.asarray(w1, jnp.float32)          # (H, IN)
    b1 = jnp.asarray(b1, jnp.float32)          # (H,)
    w2 = jnp.asarray(w2, jnp.float32)          # (O, H)
    b2 = jnp.asarray(b2, jnp.float32)          # (O,)
    w1_t = w1.T                                # (IN, H)
    w2_t = w2.T                                # (H, O)
    in_f, hidden = w1_t.shape
    out_f = w2_t.shape[1]

    # Pack factor: fill the 128-lane vreg with consecutive batch rows.
    pack = max(1, min(16, 128 // in_f)) if in_f <= 128 else 1

    eye = jnp.eye(pack, dtype=jnp.float32)
    # w1_bd[p*IN + i, q*H + h] = eye[p, q] * w1_t[i, h]
    w1_bd = jnp.einsum("pq,ih->piqh", eye, w1_t).reshape(pack * in_f, pack * hidden)
    # w2_bd[p*H + h, q*O + o] = eye[p, q] * w2_t[h, o]
    w2_bd = jnp.einsum("pq,ho->phqo", eye, w2_t).reshape(pack * hidden, pack * out_f)
    b1_tiled = jnp.tile(b1, pack).reshape(1, pack * hidden)
    b2_tiled = jnp.tile(b2, pack).reshape(1, pack * out_f)

    wd = jnp.bfloat16 if use_bf16 else jnp.float32
    return (w1_bd.astype(wd), b1_tiled, w2_bd.astype(wd), b2_tiled, pack)


@functools.partial(jax.jit, static_argnames=("pack",))
def shallow_correction_net(x, w1_bd, b1_t, w2_bd, b2_t, *, pack):
    """Forward pass.  Params must come from `prepare_params`.

    Args:
      x     : (B, inputFeatures) float32
      w1_bd : (pack*IN, pack*H)   block-diagonal
      b1_t  : (1, pack*H)
      w2_bd : (pack*H, pack*O)    block-diagonal
      b2_t  : (1, pack*O)
      pack  : static int from prepare_params
    Returns:
      (B, outputSize) float32
    """
    B, in_f = x.shape
    packed_in = w1_bd.shape[0]
    packed_hidden = w1_bd.shape[1]
    packed_out = w2_bd.shape[1]
    out_f = packed_out // pack
    if packed_in != pack * in_f:
        raise ValueError("params were prepared for a different inputFeatures")

    # --- Pack `pack` consecutive batch rows into the lane axis. ---
    xk = x.astype(w1_bd.dtype)
    B_rows_pad = _round_up(B, pack)
    if B_rows_pad != B:
        xk = jnp.pad(xk, ((0, B_rows_pad - B), (0, 0)))
    B_pack = B_rows_pad // pack
    x_packed = xk.reshape(B_pack, packed_in)

    # --- Batch tile over packed rows. ---
    # Large enough to amortize per-step overhead, but split into >=2 steps once
    # there is enough work so both v7x TensorCores get a share; tile derived
    # from cdiv (not round_up) to minimize padding waste.
    MAX_TBP = 2048      # packed rows per step (x block <= 1 MiB f32)
    MIN_SPLIT = 512     # split into 2 tiles once B_pack >= this
    n_steps = max(1, pl.cdiv(B_pack, MAX_TBP))
    if n_steps == 1 and B_pack >= MIN_SPLIT:
        n_steps = 2
    TBP = _round_up(pl.cdiv(B_pack, n_steps), 8)
    n_steps = pl.cdiv(B_pack, TBP)
    B_pack_pad = n_steps * TBP
    if B_pack_pad != B_pack:
        x_packed = jnp.pad(x_packed, ((0, B_pack_pad - B_pack), (0, 0)))

    bytes_in = x_packed.dtype.itemsize
    cost = pl.CostEstimate(
        flops=2 * B_pack_pad * (packed_in * packed_hidden
                                + packed_hidden * packed_out),
        transcendentals=B_pack_pad * (packed_hidden + packed_out),
        bytes_accessed=(B_pack_pad * packed_in * bytes_in            # x in
                        + B_pack_pad * packed_out * 4                # out
                        + (packed_in * packed_hidden
                           + packed_hidden * packed_out) * bytes_in  # weights
                        + (packed_hidden + packed_out) * 4),         # biases
    )

    out_packed = pl.pallas_call(
        _shallow_correction_kernel,
        out_shape=jax.ShapeDtypeStruct((B_pack_pad, packed_out), jnp.float32),
        grid=(n_steps,),
        in_specs=[
            pl.BlockSpec((TBP, packed_in), lambda i: (i, 0)),           # x: streamed
            pl.BlockSpec((packed_in, packed_hidden), lambda i: (0, 0)),  # W1: resident
            pl.BlockSpec((1, packed_hidden), lambda i: (0, 0)),          # b1: resident
            pl.BlockSpec((packed_hidden, packed_out), lambda i: (0, 0)), # W2: resident
            pl.BlockSpec((1, packed_out), lambda i: (0, 0)),             # b2: resident
        ],
        out_specs=pl.BlockSpec((TBP, packed_out), lambda i: (i, 0)),
        compiler_params=pltpu.CompilerParams(
            dimension_semantics=("parallel",)),    # shards steps on v7x megacore
        cost_estimate=cost,
    )(x_packed, w1_bd, b1_t, w2_bd, b2_t)

    # Unpack lanes back to (rows, outputSize) and drop padding rows.
    out = out_packed.reshape(B_pack_pad * pack, out_f)
    return out[:B]


def _reference(x, w1, b1, w2, b2):
    a1 = jnp.tanh(x @ w1.T + b1)
    return jnp.tanh(a1 @ w2.T + b2)


if __name__ == "__main__":
    # Config-implied sizes (synthetic, small):
    #   SELF_CORRECTION_NN: INPUTS=16, HIDDEN_UNITS=32, OUTPUTS=4
    batch = 8
    input_features = 16
    hidden_units = 32
    output_size = 4

    key = jax.random.PRNGKey(0)
    kx, kw1, kb1, kw2, kb2 = jax.random.split(key, 5)

    x = jax.random.normal(kx, (batch, input_features), dtype=jnp.float32)
    # torch nn.Linear shapes: (out, in), (out,)
    w1 = jax.random.normal(kw1, (hidden_units, input_features), dtype=jnp.float32) * 0.1
    b1 = jax.random.normal(kb1, (hidden_units,), dtype=jnp.float32) * 0.1
    w2 = jax.random.normal(kw2, (output_size, hidden_units), dtype=jnp.float32) * 0.1
    b2 = jax.random.normal(kb2, (output_size,), dtype=jnp.float32) * 0.1

    ref = _reference(x, w1, b1, w2, b2)

    # f32 path (tight tolerance).
    w1_bd, b1_t, w2_bd, b2_t, pack = prepare_params(w1, b1, w2, b2, use_bf16=False)
    out_f32 = jax.block_until_ready(
        shallow_correction_net(x, w1_bd, b1_t, w2_bd, b2_t, pack=pack))
    assert out_f32.shape == (batch, output_size)
    assert jnp.allclose(out_f32, ref, atol=1e-5, rtol=1e-5), "f32 mismatch vs reference"

    # bf16-streamed default path (f32 accumulation/tanh -> loose tolerance).
    w1b, b1b, w2b, b2b, pack = prepare_params(w1, b1, w2, b2, use_bf16=True)
    out_bf16 = jax.block_until_ready(
        shallow_correction_net(x, w1b, b1b, w2b, b2b, pack=pack))
    assert out_bf16.shape == (batch, output_size)
    assert jnp.allclose(out_bf16, ref, atol=2e-2, rtol=2e-2), "bf16 mismatch vs reference"

    print("KERNEL_OK")
</pallas_src>

<mosaic_0001>
module attributes {stable_mosaic.version = 11 : i64} {
  func.func @_shallow_correction_kernel(%arg0: i32, %arg1: memref<8x128xf32, #tpu.memory_space<vmem>>, %arg2: memref<128x256xf32, #tpu.memory_space<vmem>>, %arg3: memref<1x256xf32, #tpu.memory_space<vmem>>, %arg4: memref<256x32xf32, #tpu.memory_space<vmem>>, %arg5: memref<1x32xf32, #tpu.memory_space<vmem>>, %arg6: memref<8x32xf32, #tpu.memory_space<vmem>>) attributes {dimension_semantics = [#tpu.dimension_semantics<parallel>], iteration_bounds = array<i64: 1>, scalar_prefetch = 0 : i64, scratch_operands = 0 : i64, tpu.core_type = #tpu.core_type<tc>, window_params = [{transform_indices = @transform_0, window_bounds = array<i64: 8, 128>}, {pipeline_mode = #tpu.pipeline_mode<synchronous>, transform_indices = @transform_1, window_bounds = array<i64: 128, 256>}, {pipeline_mode = #tpu.pipeline_mode<synchronous>, transform_indices = @transform_2, window_bounds = array<i64: 1, 256>}, {pipeline_mode = #tpu.pipeline_mode<synchronous>, transform_indices = @transform_3, window_bounds = array<i64: 256, 32>}, {pipeline_mode = #tpu.pipeline_mode<synchronous>, transform_indices = @transform_4, window_bounds = array<i64: 1, 32>}, {transform_indices = @transform_5, window_bounds = array<i64: 8, 32>}]} {
    %c0 = arith.constant 0 : index
    %c0_0 = arith.constant 0 : index
    %0 = vector.load %arg1[%c0, %c0_0] : memref<8x128xf32, #tpu.memory_space<vmem>>, vector<8x128xf32>
    %c0_1 = arith.constant 0 : index
    %c0_2 = arith.constant 0 : index
    %1 = vector.load %arg2[%c0_1, %c0_2] : memref<128x256xf32, #tpu.memory_space<vmem>>, vector<128x256xf32>
    %cst = arith.constant dense<0.000000e+00> : vector<8x256xf32>
    %2 = tpu.matmul %0, %1, %cst {dimension_numbers = #tpu.dot_dimension_numbers<[1], [0], [0], [1], [0, 0, 1, 1], [], []>} : vector<8x128xf32>, vector<128x256xf32>, vector<8x256xf32> -> vector<8x256xf32>
    %c0_3 = arith.constant 0 : index
    %c0_4 = arith.constant 0 : index
    %3 = vector.load %arg3[%c0_3, %c0_4] : memref<1x256xf32, #tpu.memory_space<vmem>>, vector<1x256xf32>
    %4 = vector.broadcast %3 : vector<1x256xf32> to vector<8x256xf32>
    %5 = arith.addf %2, %4 : vector<8x256xf32>
    %6 = math.tanh %5 : vector<8x256xf32>
    %c0_5 = arith.constant 0 : index
    %c0_6 = arith.constant 0 : index
    %7 = vector.load %arg4[%c0_5, %c0_6] : memref<256x32xf32, #tpu.memory_space<vmem>>, vector<256x32xf32>
    %cst_7 = arith.constant dense<0.000000e+00> : vector<8x32xf32>
    %8 = tpu.matmul %6, %7, %cst_7 {dimension_numbers = #tpu.dot_dimension_numbers<[1], [0], [0], [1], [0, 0, 1, 1], [], []>} : vector<8x256xf32>, vector<256x32xf32>, vector<8x32xf32> -> vector<8x32xf32>
    %c0_8 = arith.constant 0 : index
    %c0_9 = arith.constant 0 : index
    %9 = vector.load %arg5[%c0_8, %c0_9] : memref<1x32xf32, #tpu.memory_space<vmem>>, vector<1x32xf32>
    %10 = vector.broadcast %9 : vector<1x32xf32> to vector<8x32xf32>
    %11 = arith.addf %8, %10 : vector<8x32xf32>
    %12 = math.tanh %11 : vector<8x32xf32>
    %c0_10 = arith.constant 0 : index
    %c0_11 = arith.constant 0 : index
    %13 = vector.load %arg6[%c0_10, %c0_11] : memref<8x32xf32, #tpu.memory_space<vmem>>, vector<8x32xf32>
    tpu.vector_store %arg6[%c0_10, %c0_11], %12 {strides = array<i32>} : memref<8x32xf32, #tpu.memory_space<vmem>>, vector<8x32xf32>,
    return
  }
  func.func @transform_0(%arg0: i32) -> (i32, i32) {
    %c0_i32 = arith.constant 0 : i32
    %c0_i32_0 = arith.constant 0 : i32
    return %arg0, %c0_i32 : i32, i32
  }
  func.func @transform_1(%arg0: i32) -> (i32, i32) {
    %c0_i32 = arith.constant 0 : i32
    %c0_i32_0 = arith.constant 0 : i32
    %c0_i32_1 = arith.constant 0 : i32
    return %c0_i32, %c0_i32_0 : i32, i32
  }
  func.func @transform_2(%arg0: i32) -> (i32, i32) {
    %c0_i32 = arith.constant 0 : i32
    %c0_i32_0 = arith.constant 0 : i32
    %c0_i32_1 = arith.constant 0 : i32
    return %c0_i32, %c0_i32_0 : i32, i32
  }
  func.func @transform_3(%arg0: i32) -> (i32, i32) {
    %c0_i32 = arith.constant 0 : i32
    %c0_i32_0 = arith.constant 0 : i32
    %c0_i32_1 = arith.constant 0 : i32
    return %c0_i32, %c0_i32_0 : i32, i32
  }
  func.func @transform_4(%arg0: i32) -> (i32, i32) {
    %c0_i32 = arith.constant 0 : i32
    %c0_i32_0 = arith.constant 0 : i32
    %c0_i32_1 = arith.constant 0 : i32
    return %c0_i32, %c0_i32_0 : i32, i32
  }
  func.func @transform_5(%arg0: i32) -> (i32, i32) {
    %c0_i32 = arith.constant 0 : i32
    %c0_i32_0 = arith.constant 0 : i32
    return %arg0, %c0_i32 : i32, i32
  }
}

</mosaic_0001>

<bundles_post_ra>
// kernel: shallow_correction_net.1
= control target key start
LH: loop header
LB: loop body
LE: loop exit
PB: predicated region body
PF: predicated region fallthrough
CT: control target
= control target key end

     0   :  { %vm178_vm0 = vcmask 261120   ;;  %s425_s1 = inlined_call_operand.vmem [shape: f32[128,256], index: 1, kind: input, shape index: {}]   ;;  %s426_s3 = inlined_call_operand.vmem [shape: f32[256,32], index: 3, kind: input, shape index: {}]   ;;  %s427_s0 = inlined_call_operand.vmem [shape: f32[8,128], index: 0, kind: input, shape index: {}]   ;;  %s428_s4 = inlined_call_operand.vmem [shape: f32[1,32], index: 4, kind: input, shape index: {}]   ;;  %s429_s2 = inlined_call_operand.vmem [shape: f32[1,256], index: 2, kind: input, shape index: {}]   ;;  %s430_s5 = inlined_call_operand.vmem [shape: f32[8,32], index: 5, kind: output, shape index: {}]  }
   0x1   :  { %v51_v0 = vld [vmem:[%s425_s1 + $0xf0] sm:$0xff]  ;;  %v49_v1 = vld [vmem:[%s425_s1 + $0xe0] sm:$0xff]  ;;  %v52_v2 = vld [vmem:[%s425_s1 + $0xf8] sm:$0xff] }
   0x2   :  { %59 = vmatpush.msra.mxu0 %v51_v0  ;;  %79 = vmatpush.msra.mxu1 %v52_v2  ;;  %v50_v3 = vld [vmem:[%s425_s1 + $0xe8] sm:$0xff]  ;;  %v47_v4 = vld [vmem:[%s425_s1 + $0xd0] sm:$0xff]  ;;  %v48_v5 = vld [vmem:[%s425_s1 + $0xd8] sm:$0xff] }
   0x3   :  { %v45_v6 = vld [vmem:[%s425_s1 + $0xc0] sm:$0xff]  ;;  %v46_v7 = vld [vmem:[%s425_s1 + $0xc8] sm:$0xff]  ;;  %v43_v8 = vld [vmem:[%s425_s1 + $0xb0] sm:$0xff] }
   0x4   :  { %60 = vmatpush.msra.mxu0 %v49_v1  ;;  %80 = vmatpush.msra.mxu1 %v50_v3  ;;  %v44_v9 = vld [vmem:[%s425_s1 + $0xb8] sm:$0xff]  ;;  %v41_v10 = vld [vmem:[%s425_s1 + $0xa0] sm:$0xff]  ;;  %v42_v11 = vld [vmem:[%s425_s1 + $0xa8] sm:$0xff] }
   0x5   :  { %v39_v12 = vld [vmem:[%s425_s1 + $0x90] sm:$0xff]  ;;  %v40_v13 = vld [vmem:[%s425_s1 + $0x98] sm:$0xff]  ;;  %v37_v17 = vld [vmem:[%s425_s1 + $0x80] sm:$0xff] }
   0x6   :  { %61 = vmatpush.msra.mxu0 %v47_v4  ;;  %81 = vmatpush.msra.mxu1 %v48_v5  ;;  %v116_v14 = vld [vmem:[%s426_s3 + $0x78] sm:$0xff]  ;;  %v115_v15 = vld [vmem:[%s426_s3 + $0x70] sm:$0xff]  ;;  %v38_v18 = vld [vmem:[%s425_s1 + $0x88] sm:$0xff] }
   0x7   :  { %v132_v16 = vld [vmem:[%s426_s3 + $0xf8] sm:$0xff]  ;;  %137 = vmatpush.msra.mxu2 %v116_v14  ;;  %v131_v19 = vld [vmem:[%s426_s3 + $0xf0] sm:$0xff]  ;;  %v114_v20 = vld [vmem:[%s426_s3 + $0x68] sm:$0xff] }
   0x8   :  { %62 = vmatpush.msra.mxu0 %v45_v6  ;;  %82 = vmatpush.msra.mxu1 %v46_v7  ;;  %v130_v21 = vld [vmem:[%s426_s3 + $0xe8] sm:$0xff]  ;;  %v35_v22 = vld [vmem:[%s425_s1 + $0x70] sm:$0xff]  ;;  %v36_v23 = vld [vmem:[%s425_s1 + $0x78] sm:$0xff] }
   0x9   :  { %157 = vmatpush.msra.mxu3 %v132_v16  ;;  %138 = vmatpush.msra.mxu2 %v115_v15  ;;  %v113_v24 = vld [vmem:[%s426_s3 + $0x60] sm:$0xff]  ;;  %v34_v27 = vld [vmem:[%s425_s1 + $0x68] sm:$0xff]  ;;  %v112_v28 = vld [vmem:[%s426_s3 + $0x58] sm:$0xff] }
   0xa   :  { %63 = vmatpush.msra.mxu0 %v43_v8  ;;  %83 = vmatpush.msra.mxu1 %v44_v9  ;;  %v129_v25 = vld [vmem:[%s426_s3 + $0xe0] sm:$0xff]  ;;  %v128_v29 = vld [vmem:[%s426_s3 + $0xd8] sm:$0xff]  ;;  %v31_v30 = vld [vmem:[%s425_s1 + $0x50] sm:$0xff] }
   0xb   :  { %158 = vmatpush.msra.mxu3 %v131_v19  ;;  %v33_v26 = vld [vmem:[%s425_s1 + $0x60] sm:$0xff]  ;;  %139 = vmatpush.msra.mxu2 %v114_v20  ;;  %v32_v31 = vld [vmem:[%s425_s1 + $0x58] sm:$0xff]  ;;  %v111_v32 = vld [vmem:[%s426_s3 + $0x50] sm:$0xff] }
   0xc   :  { %64 = vmatpush.msra.mxu0 %v41_v10  ;;  %84 = vmatpush.msra.mxu1 %v42_v11  ;;  %v127_v33 = vld [vmem:[%s426_s3 + $0xd0] sm:$0xff]  ;;  %v29_v34 = vld [vmem:[%s425_s1 + $0x40] sm:$0xff]  ;;  %v30_v35 = vld [vmem:[%s425_s1 + $0x48] sm:$0xff] }
   0xd   :  { %159 = vmatpush.msra.mxu3 %v130_v21  ;;  %140 = vmatpush.msra.mxu2 %v113_v24  ;;  %v110_v36 = vld [vmem:[%s426_s3 + $0x48] sm:$0xff]  ;;  %v27_v38 = vld [vmem:[%s425_s1 + $0x30] sm:$0xff]  ;;  %v28_v39 = vld [vmem:[%s425_s1 + $0x38] sm:$0xff] }
   0xe   :  { %65 = vmatpush.msra.mxu0 %v39_v12  ;;  %85 = vmatpush.msra.mxu1 %v40_v13  ;;  %v126_v37 = vld [vmem:[%s426_s3 + $0xc8] sm:$0xff]  ;;  %v109_v40 = vld [vmem:[%s426_s3 + $0x40] sm:$0xff]  ;;  %v108_v44 = vld [vmem:[%s426_s3 + $0x38] sm:$0xff] }
   0xf   :  { %160 = vmatpush.msra.mxu3 %v129_v25  ;;  %141 = vmatpush.msra.mxu2 %v112_v28  ;;  %v125_v41 = vld [vmem:[%s426_s3 + $0xc0] sm:$0xff]  ;;  %v26_v43 = vld [vmem:[%s425_s1 + $0x28] sm:$0xff]  ;;  %v124_v45 = vld [vmem:[%s426_s3 + $0xb8] sm:$0xff] }
  0x10   :  { %66 = vmatpush.msra.mxu0 %v37_v17  ;;  %86 = vmatpush.msra.mxu1 %v38_v18  ;;  %v25_v42 = vld [vmem:[%s425_s1 + $0x20] sm:$0xff]  ;;  %v23_v46 = vld [vmem:[%s425_s1 + $0x10] sm:$0xff]  ;;  %v24_v47 = vld [vmem:[%s425_s1 + $0x18] sm:$0xff] }
  0x11   :  { %161 = vmatpush.msra.mxu3 %v128_v29  ;;  %142 = vmatpush.msra.mxu2 %v111_v32  ;;  %v107_v48 = vld [vmem:[%s426_s3 + $0x30] sm:$0xff]  ;;  %v21_v50 = vld [vmem:[%s425_s1] sm:$0xff]  ;;  %v22_v51 = vld [vmem:[%s425_s1 + $0x8] sm:$0xff] }
  0x12   :  { %67 = vmatpush.msra.mxu0 %v35_v22  ;;  %87 = vmatpush.msra.mxu1 %v36_v23  ;;  %v123_v49 = vld [vmem:[%s426_s3 + $0xb0] sm:$0xff]  ;;  %v20_v52 = vld [vmem:[%s427_s0] sm:$0xff]  ;;  %v106_v53 = vld [vmem:[%s426_s3 + $0x28] sm:$0xff] }
  0x13   :  { %162 = vmatpush.msra.mxu3 %v127_v33  ;;  %143 = vmatpush.msra.mxu2 %v110_v36  ;;  %v105_v54 = vld [vmem:[%s426_s3 + $0x20] sm:$0xff]  ;;  %v122_v55 = vld [vmem:[%s426_s3 + $0xa8] sm:$0xff]  ;;  %v104_v56 = vld [vmem:[%s426_s3 + $0x18] sm:$0xff] }
  0x14   :  { %68 = vmatpush.msra.mxu0 %v33_v26  ;;  %88 = vmatpush.msra.mxu1 %v34_v27  ;;  %v121_v57 = vld [vmem:[%s426_s3 + $0xa0] sm:$0xff]  ;;  %v103_v58 = vld [vmem:[%s426_s3 + $0x10] sm:$0xff]  ;;  %v120_v59 = vld [vmem:[%s426_s3 + $0x98] sm:$0xff] }
  0x15   :  { %163 = vmatpush.msra.mxu3 %v126_v37  ;;  %144 = vmatpush.msra.mxu2 %v109_v40  ;;  %v102_v60 = vld [vmem:[%s426_s3 + $0x8] sm:$0xff]  ;;  %v119_v61 = vld [vmem:[%s426_s3 + $0x90] sm:$0xff]  ;;  %v101_v62 = vld [vmem:[%s426_s3] sm:$0xff] }
  0x16   :  { %69 = vmatpush.msra.mxu0 %v31_v30  ;;  %89 = vmatpush.msra.mxu1 %v32_v31  ;;  %v118_v63 = vld [vmem:[%s426_s3 + $0x88] sm:$0xff]  ;;  %v117_v0 = vld [vmem:[%s426_s3 + $0x80] sm:$0xff] }
  0x17   :  { %164 = vmatpush.msra.mxu3 %v125_v41  ;;  %145 = vmatpush.msra.mxu2 %v108_v44  ;;  %v53_v1 = vld [vmem:[%s429_s2] sm:$0x3] }
  0x18   :  { %70 = vmatpush.msra.mxu0 %v29_v34  ;;  %90 = vmatpush.msra.mxu1 %v30_v35  ;;  %v55_v2 = vperm.slane %v53_v1, 0  ;;  %v56_v3 = vperm.slane %v53_v1, 1  ;;  %v184_v10 = vld [vmem:[%s428_s4] ss:$0 sm:$0xff] }
  0x19   :  { %165 = vmatpush.msra.mxu3 %v124_v45  ;;  %146 = vmatpush.msra.mxu2 %v107_v48 }
  0x1a   :  { %71 = vmatpush.msra.mxu0 %v27_v38  ;;  %91 = vmatpush.msra.mxu1 %v28_v39 }
  0x1b   :  { %166 = vmatpush.msra.mxu3 %v123_v49  ;;  %147 = vmatpush.msra.mxu2 %v106_v53 }
  0x1c   :  { %72 = vmatpush.msra.mxu0 %v25_v42  ;;  %92 = vmatpush.msra.mxu1 %v26_v43 }
  0x1d   :  { %148 = vmatpush.msra.mxu2 %v105_v54  ;;  %167 = vmatpush.msra.mxu3 %v122_v55 }
  0x1e   :  { %73 = vmatpush.msra.mxu0 %v23_v46  ;;  %93 = vmatpush.msra.mxu1 %v24_v47 }
  0x1f   :  { %149 = vmatpush.msra.mxu2 %v104_v56  ;;  %168 = vmatpush.msra.mxu3 %v121_v57 }
  0x20   :  { %74 = vmatpush.msra.mxu0 %v21_v50  ;;  %94 = vmatpush.msra.mxu1 %v22_v51 }
  0x21   :  { %75 = vmatmul.f32.vlgmr.msra.gmra.mxu0 %v20_v52  ;;  %95 = vmatmul.f32.vlgmr.msra.gmra.mxu1 %v20_v52 }
  0x22   :  { %150 = vmatpush.msra.mxu2 %v103_v58  ;;  %169 = vmatpush.msra.mxu3 %v120_v59 }
  0x24   :  { %151 = vmatpush.msra.mxu2 %v102_v60  ;;  %170 = vmatpush.msra.mxu3 %v119_v61 }
  0x26   :  { %152 = vmatpush.msra.mxu2 %v101_v62  ;;  %171 = vmatpush.msra.mxu3 %v118_v63 }
  0x28   :  { %172 = vmatpush.msra.mxu3 %v117_v0 }
  0x9e   :  { %v76_v4 = vpop.f32.mrf.mxu0  ;;  %v96_v5 = vpop.f32.mrf.mxu1 }
  0x9f   :  { %v77_v6 = vadd.f32 %v76_v4, %v55_v2  ;;  %v97_v7 = vadd.f32 %v96_v5, %v56_v3 }
  0xa1   :  { %185 = vtanh.f32 %v77_v6 }
  0xa2   :  { %187 = vtanh.f32 %v97_v7 }
  0xa7   :  { %v186_v8 = vpop.eup %185 }
  0xa8   :  { %v188_v9 = vpop.eup %187  ;;  %153 = vmatmul.f32.vlgmr.msra.gmra.mxu2 %v186_v8 }
  0xa9   :  { %173 = vmatmul.f32.vlgmr.msra.gmra.mxu3 %v188_v9 }
 0x12b   :  { %v154_v11 = vpop.f32.mrf.mxu2 }
 0x12c   :  { %v155_v12 = vadd.f32 %v184_v10, %v154_v11  ;;  %v174_v13 = vpop.f32.mrf.mxu3 }
 0x12e   :  { %v175_v14 = vadd.f32 %v174_v13, %v155_v12 }
 0x130   :  { %189 = vtanh.f32 %v175_v14 }
 0x136   :  { %v190_v15 = vpop.eup %189 }
 0x137   :  { %179 = vst.msk [vmem:[%s430_s5] sm:$0xff] %vm178_vm0, %v190_v15 }

</bundles_post_ra>
